<compile_context>
chip_gen: v5e
topology: v5e:2x2
jax: 0.10.0
libtpu: 0.0.40
codegen_flags: <defaults>
</compile_context>

<pallas_src>
import numpy as np
import jax
import jax.numpy as jnp
from jax import lax
from jax.experimental import pallas as pl
from jax.experimental.pallas import tpu as pltpu

HIDDEN = 32          # hidden_size
OUTPUT = 64          # output_size (vocabulary / item count)
MAXLEN = 100         # max_length
NUM_LAYERS = 1

MAXLEN_PAD = 128     # lane-padded attention length
OUTPUT_PAD = 128     # lane-padded output size
G3 = 3 * HIDDEN      # 96, GRU gate width

# ---- packed static-weight slab layout (rows = contraction dim, 8-aligned) --
#   rows 0:64  : weights      row 64 : bias of the slot at the same columns
C_ATTN = 0      # attn.T           rows 0:64,  cols   0:100   (+ b_attn)
C_WHH  = 128    # W_hh.T           rows 32:64, cols 128:224   (+ b_hh)
C_COMB = 256    # attn_combine.T   rows 0:64,  cols 256:288   (+ b_comb)
C_EMB  = 384    # embedding table  rows 0:64,  cols 384:416
C_WIH  = 512    # W_ih.T           rows 0:32,  cols 512:608   (+ b_ih)
C_C5   = 640    # attn_combine5.T  rows 0:64,  cols 640:704   (+ b_c5)
C_OUT  = 768    # out.T            rows 0:32,  cols 768:832   (+ b_out)
BIAS_ROW = 64
W_ROWS = 72
W_COLS = 896

NEG = -1e30          # Python float -> literal (a jnp const would be captured)


# ---------------------------------------------------------------------------
# Kernel: grid=(T,) recurrent decode, weights/enc/state resident in VMEM
# ---------------------------------------------------------------------------
def decoder_kernel(counts_ref, state_ref, enc_ref, w_ref,
                   probs_ref, hid_out_ref,
                   hid_sc, om_sc, hw_sc):
    f32 = jnp.float32
    dot = lambda a, b: jnp.dot(a, b, preferred_element_type=f32)
    H = HIDDEN
    t = pl.program_id(0)

    # ---- t == 0: initialize carried state (hidden + loop-invariant history
    #      re-weighting terms) ------------------------------------------------
    @pl.when(t == 0)
    def _():
        hid_sc[...] = state_ref[0:1, 0:H]                       # initial hidden
        hist = state_ref[1:2, :]                                # (1,128)
        wt = jax.nn.sigmoid(
            dot(hist[:, 0:OUTPUT], w_ref[0:OUTPUT, C_C5:C_C5 + 128])
            + w_ref[BIAS_ROW:BIAS_ROW + 1, C_C5:C_C5 + 128])    # (1,128)
        mask = (hist != 0.0).astype(f32)
        om_sc[...] = 1.0 - mask * wt                            # (1 - mask*wt)
        hw_sc[...] = hist * wt                                  # hist*wt

    hid = hid_sc[...]                                           # (1,32)
    counts = counts_ref[...][0, 0:1, :]                         # (1,128)

    # ---- basket embedding sum (use_average_embedding: /= hidden_size) ------
    emb = dot(counts[:, 0:OUTPUT],
              w_ref[0:OUTPUT, C_EMB:C_EMB + H]) * (1.0 / H)     # (1,32)

    # ---- fused first push: attention scores (lanes 0:128) + gh (128:224) ---
    # cat(emb, hid) @ [attn.T | [0; W_hh.T]]  split into two aligned dots
    big = (dot(emb, w_ref[0:H, 0:256])
           + dot(hid, w_ref[H:2 * H, 0:256])
           + w_ref[BIAS_ROW:BIAS_ROW + 1, 0:256])               # (1,256)
    scores = big[:, 0:MAXLEN_PAD]
    gh = big[:, 128:128 + G3]                                   # hid @ W_hh.T + b_hh

    col = lax.broadcasted_iota(jnp.int32, (1, MAXLEN_PAD), 1)
    scores = jnp.where(col < MAXLEN, scores, NEG)
    m = jnp.max(scores, axis=-1, keepdims=True)
    e = jnp.exp(scores - m)
    attn_w = e / jnp.sum(e, axis=-1, keepdims=True)

    # attn_applied = bmm(attn_weights, encoder_outputs); padded rows weigh 0
    attn_applied = dot(attn_w, enc_ref[...])                    # (1,32)

    # ---- attn_combine + relu ------------------------------------------------
    comb = (dot(emb, w_ref[0:H, C_COMB:C_COMB + H])
            + dot(attn_applied, w_ref[H:2 * H, C_COMB:C_COMB + H])
            + w_ref[BIAS_ROW:BIAS_ROW + 1, C_COMB:C_COMB + H])  # (1,32)
    x = jnp.maximum(comb, 0.0)

    # ---- single-step GRU (gh already computed off the critical chain) ------
    gi = (dot(x, w_ref[0:H, C_WIH:C_WIH + G3])
          + w_ref[BIAS_ROW:BIAS_ROW + 1, C_WIH:C_WIH + G3])     # (1,96)
    r = jax.nn.sigmoid(gi[:, 0:H] + gh[:, 0:H])
    z = jax.nn.sigmoid(gi[:, H:2 * H] + gh[:, H:2 * H])
    n = jnp.tanh(gi[:, 2 * H:G3] + r * gh[:, 2 * H:G3])
    h_new = (1.0 - z) * n + z * hid                             # (1,32)

    hid_sc[...] = h_new
    hid_out_ref[...] = h_new

    # ---- output projection + history re-weighting ---------------------------
    logits = (dot(h_new, w_ref[0:H, C_OUT:C_OUT + 128])
              + w_ref[BIAS_ROW:BIAS_ROW + 1, C_OUT:C_OUT + 128])  # (1,128)
    logits = logits * om_sc[...] + hw_sc[...]

    # ---- final softmax over the real OUTPUT lanes ----------------------------
    ocol = lax.broadcasted_iota(jnp.int32, (1, OUTPUT_PAD), 1)
    logits = jnp.where(ocol < OUTPUT, logits, NEG)
    m2 = jnp.max(logits, axis=-1, keepdims=True)
    e2 = jnp.exp(logits - m2)
    probs = e2 / jnp.sum(e2, axis=-1, keepdims=True)            # (1,128)
    probs_ref[...] = jnp.broadcast_to(probs.reshape(1, 1, OUTPUT_PAD),
                                      (1, 8, OUTPUT_PAD))


# ---------------------------------------------------------------------------
# Parameters (PyTorch layout) + one-time packing into the single weight slab
# ---------------------------------------------------------------------------
def init_params(key):
    ks = jax.random.split(key, 13)
    u = lambda k, shape, s=0.1: jax.random.uniform(k, shape, jnp.float32, -s, s)
    p = {}
    p['embedding'] = u(ks[0], (OUTPUT, HIDDEN), 0.5)
    p['attn_w'] = u(ks[1], (MAXLEN, 2 * HIDDEN))      # nn.Linear(2H, max_length)
    p['attn_b'] = u(ks[2], (MAXLEN,))
    p['comb_w'] = u(ks[3], (HIDDEN, 2 * HIDDEN))      # nn.Linear(2H, H)
    p['comb_b'] = u(ks[4], (HIDDEN,))
    p['w_ih'] = u(ks[5], (3 * HIDDEN, HIDDEN))        # GRU weight_ih_l0
    p['w_hh'] = u(ks[6], (3 * HIDDEN, HIDDEN))        # GRU weight_hh_l0
    p['b_ih'] = u(ks[7], (3 * HIDDEN,))
    p['b_hh'] = u(ks[8], (3 * HIDDEN,))
    p['out_w'] = u(ks[9], (OUTPUT, HIDDEN))           # nn.Linear(H, V)
    p['out_b'] = u(ks[10], (OUTPUT,))
    p['c5_w'] = u(ks[11], (OUTPUT, OUTPUT))           # nn.Linear(V, V)
    p['c5_b'] = u(ks[12], (OUTPUT,))
    # NOTE: self.attn1 and self.dropout are unused in forward (use_dropout = 0).
    return p


def prepare_params(p):
    """One-time packing of every weight/bias into one (72, 896) VMEM slab."""
    H = HIDDEN
    w = np.zeros((W_ROWS, W_COLS), np.float32)
    w[0:2 * H, C_ATTN:C_ATTN + MAXLEN] = np.asarray(p['attn_w']).T
    w[H:2 * H, C_WHH:C_WHH + G3] = np.asarray(p['w_hh']).T
    w[0:2 * H, C_COMB:C_COMB + H] = np.asarray(p['comb_w']).T
    w[0:OUTPUT, C_EMB:C_EMB + H] = np.asarray(p['embedding'])
    w[0:H, C_WIH:C_WIH + G3] = np.asarray(p['w_ih']).T
    w[0:OUTPUT, C_C5:C_C5 + OUTPUT] = np.asarray(p['c5_w']).T
    w[0:H, C_OUT:C_OUT + OUTPUT] = np.asarray(p['out_w']).T
    # biases in row 64, under the columns of their matching slot
    w[BIAS_ROW, C_ATTN:C_ATTN + MAXLEN] = np.asarray(p['attn_b'])
    w[BIAS_ROW, C_WHH:C_WHH + G3] = np.asarray(p['b_hh'])
    w[BIAS_ROW, C_COMB:C_COMB + H] = np.asarray(p['comb_b'])
    w[BIAS_ROW, C_WIH:C_WIH + G3] = np.asarray(p['b_ih'])
    w[BIAS_ROW, C_C5:C_C5 + OUTPUT] = np.asarray(p['c5_b'])
    w[BIAS_ROW, C_OUT:C_OUT + OUTPUT] = np.asarray(p['out_b'])
    return jnp.asarray(w)


def baskets_to_counts(baskets, T):
    """Host-side: fixed-shape per-step item-count vectors (handles duplicates,
    no retrace for variable basket lengths)."""
    c = np.zeros((T, 8, OUTPUT_PAD), np.float32)
    for t, basket in enumerate(baskets):
        for idx in basket:
            c[t, 0, idx] += 1.0
    return jnp.asarray(c)


# ---------------------------------------------------------------------------
# Fused T-step decode: ONE pallas_call; T=1 == the module forward
# ---------------------------------------------------------------------------
@jax.jit
def attn_decoder_decode(counts, hidden0, encoder_outputs, history_record, wslab):
    T = counts.shape[0]
    f32 = jnp.float32
    # per-call (NOT per-step) glue: pack hidden0 + history into one slab,
    # pad the loop-invariant encoder block once.
    state = (jnp.zeros((8, 128), f32)
             .at[0, :HIDDEN].set(hidden0.reshape(-1))
             .at[1, :OUTPUT].set(history_record))
    enc_pad = jnp.zeros((MAXLEN_PAD, HIDDEN), f32).at[:MAXLEN].set(encoder_outputs)

    grid_spec = pltpu.PrefetchScalarGridSpec(
        num_scalar_prefetch=0,
        grid=(T,),
        in_specs=[
            pl.BlockSpec((1, 8, OUTPUT_PAD), lambda t: (t, 0, 0)),   # per-step counts
            pl.BlockSpec((8, 128), lambda t: (0, 0)),                # hidden0 + history
            pl.BlockSpec((MAXLEN_PAD, HIDDEN), lambda t: (0, 0)),    # encoder outputs
            pl.BlockSpec((W_ROWS, W_COLS), lambda t: (0, 0)),        # packed weights
        ],
        out_specs=(
            pl.BlockSpec((1, 8, OUTPUT_PAD), lambda t: (t, 0, 0)),   # per-step probs
            pl.BlockSpec((1, HIDDEN), lambda t: (0, 0)),             # final hidden
        ),
        scratch_shapes=[
            pltpu.VMEM((1, HIDDEN), jnp.float32),      # carried hidden state
            pltpu.VMEM((1, OUTPUT_PAD), jnp.float32),  # 1 - mask*wt   (t==0)
            pltpu.VMEM((1, OUTPUT_PAD), jnp.float32),  # hist*wt       (t==0)
        ],
    )
    probs_all, hid_final = pl.pallas_call(
        decoder_kernel,
        out_shape=(jax.ShapeDtypeStruct((T, 8, OUTPUT_PAD), jnp.float32),
                   jax.ShapeDtypeStruct((1, HIDDEN), jnp.float32)),
        grid_spec=grid_spec,
        compiler_params=pltpu.CompilerParams(
            dimension_semantics=("arbitrary",)),       # steps are sequential
    )(counts, state, enc_pad, wslab)

    # TODO(synk): for multiple independent sequences, add a leading "parallel"
    # batch grid axis so both TensorCores are used on v7x.
    return probs_all[:, 0, :OUTPUT], hid_final.reshape(NUM_LAYERS, 1, HIDDEN)


# ---------------------------------------------------------------------------
# Pure-JAX mirror of the PyTorch forward (single step, correctness check)
# ---------------------------------------------------------------------------
def reference_forward(basket_idx, hidden, enc, hist, p):
    H = HIDDEN
    emb_sum = jnp.sum(p['embedding'][basket_idx], axis=0, keepdims=True) / H
    hid = hidden[0]
    cat1 = jnp.concatenate([emb_sum, hid], axis=1)
    attn_w = jax.nn.softmax(cat1 @ p['attn_w'].T + p['attn_b'], axis=1)
    attn_applied = attn_w @ enc
    out = jnp.concatenate([emb_sum, attn_applied], axis=1) @ p['comb_w'].T + p['comb_b']
    x = jax.nn.relu(out)
    gi = x @ p['w_ih'].T + p['b_ih']
    gh = hid @ p['w_hh'].T + p['b_hh']
    r = jax.nn.sigmoid(gi[:, :H] + gh[:, :H])
    z = jax.nn.sigmoid(gi[:, H:2 * H] + gh[:, H:2 * H])
    n = jnp.tanh(gi[:, 2 * H:] + r * gh[:, 2 * H:])
    h_new = (1.0 - z) * n + z * hid
    logits = h_new @ p['out_w'].T + p['out_b']
    hist2 = hist.reshape(1, OUTPUT)
    mask = (hist2 != 0).astype(jnp.float32)
    wt = jax.nn.sigmoid(hist2 @ p['c5_w'].T + p['c5_b'])
    logits = logits * (1.0 - mask * wt) + hist2 * wt
    probs = jax.nn.softmax(logits, axis=1)
    return probs, h_new.reshape(NUM_LAYERS, 1, HIDDEN)


if __name__ == "__main__":
    key = jax.random.PRNGKey(0)
    kp, kh, ke, kv, km = jax.random.split(key, 5)

    params = init_params(kp)
    wslab = prepare_params(params)            # one-time weight packing

    T = 4
    baskets = [[3, 17, 42, 5], [7, 7, 19], [0, 63, 12, 30, 8], [2]]
    counts = baskets_to_counts(baskets, T)

    hidden0 = jax.random.normal(kh, (NUM_LAYERS, 1, HIDDEN), jnp.float32)
    encoder_outputs = jax.random.normal(ke, (MAXLEN, HIDDEN), jnp.float32)
    hist_vals = jax.random.uniform(kv, (OUTPUT,), jnp.float32, 0.0, 1.0)
    hist_keep = (jax.random.uniform(km, (OUTPUT,)) > 0.5).astype(jnp.float32)
    history_record = hist_vals * hist_keep    # has exact zeros for the mask

    probs, h_final = attn_decoder_decode(counts, hidden0, encoder_outputs,
                                         history_record, wslab)
    jax.block_until_ready((probs, h_final))

    # reference: apply the module forward T times, carrying the hidden state
    hid = hidden0
    ref_probs = []
    for t in range(T):
        p_t, hid = reference_forward(jnp.asarray(baskets[t], jnp.int32), hid,
                                     encoder_outputs, history_record, params)
        ref_probs.append(p_t)
    ref_probs = jnp.concatenate(ref_probs, axis=0)      # (T, OUTPUT)

    np.testing.assert_allclose(np.asarray(probs), np.asarray(ref_probs),
                               rtol=1e-5, atol=1e-5)
    np.testing.assert_allclose(np.asarray(h_final), np.asarray(hid),
                               rtol=1e-5, atol=1e-5)
    np.testing.assert_allclose(np.asarray(jnp.sum(probs, axis=1)),
                               np.ones(T, np.float32), atol=1e-4)
    print("KERNEL_OK")
</pallas_src>

<mosaic_0001>
module attributes {stable_mosaic.version = 11 : i64} {
  func.func @decoder_kernel(%arg0: i32, %arg1: memref<1x8x128xf32, #tpu.memory_space<vmem>>, %arg2: memref<8x128xf32, #tpu.memory_space<vmem>>, %arg3: memref<128x32xf32, #tpu.memory_space<vmem>>, %arg4: memref<72x896xf32, #tpu.memory_space<vmem>>, %arg5: memref<1x8x128xf32, #tpu.memory_space<vmem>>, %arg6: memref<1x32xf32, #tpu.memory_space<vmem>>, %arg7: memref<1x32xf32, #tpu.memory_space<vmem>>, %arg8: memref<1x128xf32, #tpu.memory_space<vmem>>, %arg9: memref<1x128xf32, #tpu.memory_space<vmem>>) attributes {dimension_semantics = [#tpu.dimension_semantics<arbitrary>], iteration_bounds = array<i64: 4>, scalar_prefetch = 0 : i64, scratch_operands = 3 : i64, tpu.core_type = #tpu.core_type<tc>, window_params = [{transform_indices = @transform_0, window_bounds = array<i64: 1, 8, 128>}, {pipeline_mode = #tpu.pipeline_mode<synchronous>, transform_indices = @transform_1, window_bounds = array<i64: 8, 128>}, {pipeline_mode = #tpu.pipeline_mode<synchronous>, transform_indices = @transform_2, window_bounds = array<i64: 128, 32>}, {pipeline_mode = #tpu.pipeline_mode<synchronous>, transform_indices = @transform_3, window_bounds = array<i64: 72, 896>}, {transform_indices = @transform_4, window_bounds = array<i64: 1, 8, 128>}, {pipeline_mode = #tpu.pipeline_mode<synchronous>, transform_indices = @transform_5, window_bounds = array<i64: 1, 32>}]} {
    %c0_i32 = arith.constant 0 : i32
    %0 = arith.cmpi eq, %arg0, %c0_i32 : i32
    %1 = arith.extui %0 : i1 to i32
    %c0_i32_0 = arith.constant 0 : i32
    %2 = arith.cmpi ne, %1, %c0_i32_0 : i32
    scf.if %2 {
      %c0_52 = arith.constant 0 : index
      %c0_53 = arith.constant 0 : index
      %104 = vector.load %arg2[%c0_52, %c0_53] : memref<8x128xf32, #tpu.memory_space<vmem>>, vector<1x32xf32>
      %c0_54 = arith.constant 0 : index
      %c0_55 = arith.constant 0 : index
      %105 = vector.load %arg7[%c0_54, %c0_55] : memref<1x32xf32, #tpu.memory_space<vmem>>, vector<1x32xf32>
      tpu.vector_store %arg7[%c0_54, %c0_55], %104 {strides = array<i32>} : memref<1x32xf32, #tpu.memory_space<vmem>>, vector<1x32xf32>,
      %c1 = arith.constant 1 : index
      %c0_56 = arith.constant 0 : index
      %106 = vector.load %arg2[%c1, %c0_56] : memref<8x128xf32, #tpu.memory_space<vmem>>, vector<1x128xf32>
      %107 = vector.extract_strided_slice %106 {offsets = [0, 0], sizes = [1, 64], strides = [1, 1]} : vector<1x128xf32> to vector<1x64xf32>
      %c0_57 = arith.constant 0 : index
      %c640 = arith.constant 640 : index
      %108 = vector.load %arg4[%c0_57, %c640] : memref<72x896xf32, #tpu.memory_space<vmem>>, vector<64x128xf32>
      %cst_58 = arith.constant dense<0.000000e+00> : vector<1x128xf32>
      %109 = tpu.matmul %107, %108, %cst_58 {dimension_numbers = #tpu.dot_dimension_numbers<[1], [0], [0], [1], [0, 0, 1, 1], [], []>} : vector<1x64xf32>, vector<64x128xf32>, vector<1x128xf32> -> vector<1x128xf32>
      %c64_59 = arith.constant 64 : index
      %c640_60 = arith.constant 640 : index
      %110 = vector.load %arg4[%c64_59, %c640_60] : memref<72x896xf32, #tpu.memory_space<vmem>>, vector<1x128xf32>
      %111 = arith.addf %109, %110 : vector<1x128xf32>
      %112 = arith.negf %111 : vector<1x128xf32>
      %113 = math.exp %112 : vector<1x128xf32>
      %cst_61 = arith.constant 1.000000e+00 : f32
      %114 = vector.broadcast %cst_61 : f32 to vector<1x128xf32>
      %115 = arith.addf %114, %113 : vector<1x128xf32>
      %116 = arith.divf %114, %115 : vector<1x128xf32>
      %cst_62 = arith.constant 0.000000e+00 : f32
      %117 = vector.broadcast %cst_62 : f32 to vector<1x128xf32>
      %118 = arith.cmpf one, %106, %117 : vector<1x128xf32>
      %119 = arith.extui %118 : vector<1x128xi1> to vector<1x128xi32>
      %120 = arith.sitofp %119 : vector<1x128xi32> to vector<1x128xf32>
      %121 = arith.mulf %120, %116 : vector<1x128xf32>
      %cst_63 = arith.constant 1.000000e+00 : f32
      %122 = vector.broadcast %cst_63 : f32 to vector<1x128xf32>
      %123 = arith.subf %122, %121 : vector<1x128xf32>
      %c0_64 = arith.constant 0 : index
      %c0_65 = arith.constant 0 : index
      %124 = vector.load %arg8[%c0_64, %c0_65] : memref<1x128xf32, #tpu.memory_space<vmem>>, vector<1x128xf32>
      tpu.vector_store %arg8[%c0_64, %c0_65], %123 {strides = array<i32>} : memref<1x128xf32, #tpu.memory_space<vmem>>, vector<1x128xf32>,
      %125 = arith.mulf %106, %116 : vector<1x128xf32>
      %c0_66 = arith.constant 0 : index
      %c0_67 = arith.constant 0 : index
      %126 = vector.load %arg9[%c0_66, %c0_67] : memref<1x128xf32, #tpu.memory_space<vmem>>, vector<1x128xf32>
      tpu.vector_store %arg9[%c0_66, %c0_67], %125 {strides = array<i32>} : memref<1x128xf32, #tpu.memory_space<vmem>>, vector<1x128xf32>,
    } else {
    }
    %c0 = arith.constant 0 : index
    %c0_1 = arith.constant 0 : index
    %3 = vector.load %arg7[%c0, %c0_1] : memref<1x32xf32, #tpu.memory_space<vmem>>, vector<1x32xf32>
    %c0_2 = arith.constant 0 : index
    %c0_3 = arith.constant 0 : index
    %c0_4 = arith.constant 0 : index
    %4 = vector.load %arg1[%c0_2, %c0_3, %c0_4] : memref<1x8x128xf32, #tpu.memory_space<vmem>>, vector<1x8x128xf32>
    %5 = vector.extract_strided_slice %4 {offsets = [0, 0, 0], sizes = [1, 1, 128], strides = [1, 1, 1]} : vector<1x8x128xf32> to vector<1x1x128xf32>
    %6 = vector.shape_cast %5 : vector<1x1x128xf32> to vector<1x128xf32>
    %7 = vector.extract_strided_slice %6 {offsets = [0, 0], sizes = [1, 64], strides = [1, 1]} : vector<1x128xf32> to vector<1x64xf32>
    %c0_5 = arith.constant 0 : index
    %c384 = arith.constant 384 : index
    %8 = vector.load %arg4[%c0_5, %c384] : memref<72x896xf32, #tpu.memory_space<vmem>>, vector<64x32xf32>
    %cst = arith.constant dense<0.000000e+00> : vector<1x32xf32>
    %9 = tpu.matmul %7, %8, %cst {dimension_numbers = #tpu.dot_dimension_numbers<[1], [0], [0], [1], [0, 0, 1, 1], [], []>} : vector<1x64xf32>, vector<64x32xf32>, vector<1x32xf32> -> vector<1x32xf32>
    %cst_6 = arith.constant 3.125000e-02 : f32
    %10 = vector.broadcast %cst_6 : f32 to vector<1x32xf32>
    %11 = arith.mulf %9, %10 : vector<1x32xf32>
    %c0_7 = arith.constant 0 : index
    %c0_8 = arith.constant 0 : index
    %12 = vector.load %arg4[%c0_7, %c0_8] : memref<72x896xf32, #tpu.memory_space<vmem>>, vector<32x256xf32>
    %cst_9 = arith.constant dense<0.000000e+00> : vector<1x256xf32>
    %13 = tpu.matmul %11, %12, %cst_9 {dimension_numbers = #tpu.dot_dimension_numbers<[1], [0], [0], [1], [0, 0, 1, 1], [], []>} : vector<1x32xf32>, vector<32x256xf32>, vector<1x256xf32> -> vector<1x256xf32>
    %c32 = arith.constant 32 : index
    %c0_10 = arith.constant 0 : index
    %14 = vector.load %arg4[%c32, %c0_10] : memref<72x896xf32, #tpu.memory_space<vmem>>, vector<32x256xf32>
    %cst_11 = arith.constant dense<0.000000e+00> : vector<1x256xf32>
    %15 = tpu.matmul %3, %14, %cst_11 {dimension_numbers = #tpu.dot_dimension_numbers<[1], [0], [0], [1], [0, 0, 1, 1], [], []>} : vector<1x32xf32>, vector<32x256xf32>, vector<1x256xf32> -> vector<1x256xf32>
    %16 = arith.addf %13, %15 : vector<1x256xf32>
    %c64 = arith.constant 64 : index
    %c0_12 = arith.constant 0 : index
    %17 = vector.load %arg4[%c64, %c0_12] : memref<72x896xf32, #tpu.memory_space<vmem>>, vector<1x256xf32>
    %18 = arith.addf %16, %17 : vector<1x256xf32>
    %19 = vector.extract_strided_slice %18 {offsets = [0, 0], sizes = [1, 128], strides = [1, 1]} : vector<1x256xf32> to vector<1x128xf32>
    %20 = vector.extract_strided_slice %18 {offsets = [0, 128], sizes = [1, 96], strides = [1, 1]} : vector<1x256xf32> to vector<1x96xf32>
    %21 = tpu.iota {dimensions = array<i32: 1>} : vector<1x128xi32>
    %c100_i32 = arith.constant 100 : i32
    %22 = vector.broadcast %c100_i32 : i32 to vector<1x128xi32>
    %23 = arith.cmpi slt, %21, %22 : vector<1x128xi32>
    %cst_13 = arith.constant -1.000000e+30 : f32
    %24 = vector.broadcast %cst_13 : f32 to vector<1x128xf32>
    %25 = arith.select %23, %19, %24 : vector<1x128xi1>, vector<1x128xf32>
    %cst_14 = arith.constant dense<0xFF800000> : vector<1xf32>
    %26 = vector.multi_reduction <maximumf>, %25, %cst_14 [1] : vector<1x128xf32> to vector<1xf32>
    %27 = vector.shape_cast %26 : vector<1xf32> to vector<1x1xf32>
    %28 = vector.broadcast %27 : vector<1x1xf32> to vector<1x128xf32>
    %29 = arith.subf %25, %28 : vector<1x128xf32>
    %30 = math.exp %29 : vector<1x128xf32>
    %cst_15 = arith.constant dense<0.000000e+00> : vector<1xf32>
    %31 = vector.multi_reduction <add>, %30, %cst_15 [1] : vector<1x128xf32> to vector<1xf32>
    %32 = vector.shape_cast %31 : vector<1xf32> to vector<1x1xf32>
    %33 = vector.broadcast %32 : vector<1x1xf32> to vector<1x128xf32>
    %34 = arith.divf %30, %33 : vector<1x128xf32>
    %c0_16 = arith.constant 0 : index
    %c0_17 = arith.constant 0 : index
    %35 = vector.load %arg3[%c0_16, %c0_17] : memref<128x32xf32, #tpu.memory_space<vmem>>, vector<128x32xf32>
    %cst_18 = arith.constant dense<0.000000e+00> : vector<1x32xf32>
    %36 = tpu.matmul %34, %35, %cst_18 {dimension_numbers = #tpu.dot_dimension_numbers<[1], [0], [0], [1], [0, 0, 1, 1], [], []>} : vector<1x128xf32>, vector<128x32xf32>, vector<1x32xf32> -> vector<1x32xf32>
    %c0_19 = arith.constant 0 : index
    %c256 = arith.constant 256 : index
    %37 = vector.load %arg4[%c0_19, %c256] : memref<72x896xf32, #tpu.memory_space<vmem>>, vector<32x32xf32>
    %cst_20 = arith.constant dense<0.000000e+00> : vector<1x32xf32>
    %38 = tpu.matmul %11, %37, %cst_20 {dimension_numbers = #tpu.dot_dimension_numbers<[1], [0], [0], [1], [0, 0, 1, 1], [], []>} : vector<1x32xf32>, vector<32x32xf32>, vector<1x32xf32> -> vector<1x32xf32>
    %c32_21 = arith.constant 32 : index
    %c256_22 = arith.constant 256 : index
    %39 = vector.load %arg4[%c32_21, %c256_22] : memref<72x896xf32, #tpu.memory_space<vmem>>, vector<32x32xf32>
    %cst_23 = arith.constant dense<0.000000e+00> : vector<1x32xf32>
    %40 = tpu.matmul %36, %39, %cst_23 {dimension_numbers = #tpu.dot_dimension_numbers<[1], [0], [0], [1], [0, 0, 1, 1], [], []>} : vector<1x32xf32>, vector<32x32xf32>, vector<1x32xf32> -> vector<1x32xf32>
    %41 = arith.addf %38, %40 : vector<1x32xf32>
    %c64_24 = arith.constant 64 : index
    %c256_25 = arith.constant 256 : index
    %42 = vector.load %arg4[%c64_24, %c256_25] : memref<72x896xf32, #tpu.memory_space<vmem>>, vector<1x32xf32>
    %43 = arith.addf %41, %42 : vector<1x32xf32>
    %cst_26 = arith.constant 0.000000e+00 : f32
    %44 = vector.broadcast %cst_26 : f32 to vector<1x32xf32>
    %45 = arith.maximumf %43, %44 : vector<1x32xf32>
    %c0_27 = arith.constant 0 : index
    %c512 = arith.constant 512 : index
    %46 = vector.load %arg4[%c0_27, %c512] : memref<72x896xf32, #tpu.memory_space<vmem>>, vector<32x96xf32>
    %cst_28 = arith.constant dense<0.000000e+00> : vector<1x96xf32>
    %47 = tpu.matmul %45, %46, %cst_28 {dimension_numbers = #tpu.dot_dimension_numbers<[1], [0], [0], [1], [0, 0, 1, 1], [], []>} : vector<1x32xf32>, vector<32x96xf32>, vector<1x96xf32> -> vector<1x96xf32>
    %c64_29 = arith.constant 64 : index
    %c512_30 = arith.constant 512 : index
    %48 = vector.load %arg4[%c64_29, %c512_30] : memref<72x896xf32, #tpu.memory_space<vmem>>, vector<1x96xf32>
    %49 = arith.addf %47, %48 : vector<1x96xf32>
    %50 = vector.extract_strided_slice %49 {offsets = [0, 0], sizes = [1, 32], strides = [1, 1]} : vector<1x96xf32> to vector<1x32xf32>
    %51 = vector.extract_strided_slice %20 {offsets = [0, 0], sizes = [1, 32], strides = [1, 1]} : vector<1x96xf32> to vector<1x32xf32>
    %52 = arith.addf %50, %51 : vector<1x32xf32>
    %53 = arith.negf %52 : vector<1x32xf32>
    %54 = math.exp %53 : vector<1x32xf32>
    %cst_31 = arith.constant 1.000000e+00 : f32
    %55 = vector.broadcast %cst_31 : f32 to vector<1x32xf32>
    %56 = arith.addf %55, %54 : vector<1x32xf32>
    %57 = arith.divf %55, %56 : vector<1x32xf32>
    %58 = vector.extract_strided_slice %49 {offsets = [0, 32], sizes = [1, 32], strides = [1, 1]} : vector<1x96xf32> to vector<1x32xf32>
    %59 = vector.extract_strided_slice %20 {offsets = [0, 32], sizes = [1, 32], strides = [1, 1]} : vector<1x96xf32> to vector<1x32xf32>
    %60 = arith.addf %58, %59 : vector<1x32xf32>
    %61 = arith.negf %60 : vector<1x32xf32>
    %62 = math.exp %61 : vector<1x32xf32>
    %cst_32 = arith.constant 1.000000e+00 : f32
    %63 = vector.broadcast %cst_32 : f32 to vector<1x32xf32>
    %64 = arith.addf %63, %62 : vector<1x32xf32>
    %65 = arith.divf %63, %64 : vector<1x32xf32>
    %66 = vector.extract_strided_slice %49 {offsets = [0, 64], sizes = [1, 32], strides = [1, 1]} : vector<1x96xf32> to vector<1x32xf32>
    %67 = vector.extract_strided_slice %20 {offsets = [0, 64], sizes = [1, 32], strides = [1, 1]} : vector<1x96xf32> to vector<1x32xf32>
    %68 = arith.mulf %57, %67 : vector<1x32xf32>
    %69 = arith.addf %66, %68 : vector<1x32xf32>
    %70 = math.tanh %69 : vector<1x32xf32>
    %cst_33 = arith.constant 1.000000e+00 : f32
    %71 = vector.broadcast %cst_33 : f32 to vector<1x32xf32>
    %72 = arith.subf %71, %65 : vector<1x32xf32>
    %73 = arith.mulf %72, %70 : vector<1x32xf32>
    %74 = arith.mulf %65, %3 : vector<1x32xf32>
    %75 = arith.addf %73, %74 : vector<1x32xf32>
    %c0_34 = arith.constant 0 : index
    %c0_35 = arith.constant 0 : index
    %76 = vector.load %arg7[%c0_34, %c0_35] : memref<1x32xf32, #tpu.memory_space<vmem>>, vector<1x32xf32>
    tpu.vector_store %arg7[%c0_34, %c0_35], %75 {strides = array<i32>} : memref<1x32xf32, #tpu.memory_space<vmem>>, vector<1x32xf32>,
    %c0_36 = arith.constant 0 : index
    %c0_37 = arith.constant 0 : index
    %77 = vector.load %arg6[%c0_36, %c0_37] : memref<1x32xf32, #tpu.memory_space<vmem>>, vector<1x32xf32>
    tpu.vector_store %arg6[%c0_36, %c0_37], %75 {strides = array<i32>} : memref<1x32xf32, #tpu.memory_space<vmem>>, vector<1x32xf32>,
    %c0_38 = arith.constant 0 : index
    %c768 = arith.constant 768 : index
    %78 = vector.load %arg4[%c0_38, %c768] : memref<72x896xf32, #tpu.memory_space<vmem>>, vector<32x128xf32>
    %cst_39 = arith.constant dense<0.000000e+00> : vector<1x128xf32>
    %79 = tpu.matmul %75, %78, %cst_39 {dimension_numbers = #tpu.dot_dimension_numbers<[1], [0], [0], [1], [0, 0, 1, 1], [], []>} : vector<1x32xf32>, vector<32x128xf32>, vector<1x128xf32> -> vector<1x128xf32>
    %c64_40 = arith.constant 64 : index
    %c768_41 = arith.constant 768 : index
    %80 = vector.load %arg4[%c64_40, %c768_41] : memref<72x896xf32, #tpu.memory_space<vmem>>, vector<1x128xf32>
    %81 = arith.addf %79, %80 : vector<1x128xf32>
    %c0_42 = arith.constant 0 : index
    %c0_43 = arith.constant 0 : index
    %82 = vector.load %arg8[%c0_42, %c0_43] : memref<1x128xf32, #tpu.memory_space<vmem>>, vector<1x128xf32>
    %83 = arith.mulf %81, %82 : vector<1x128xf32>
    %c0_44 = arith.constant 0 : index
    %c0_45 = arith.constant 0 : index
    %84 = vector.load %arg9[%c0_44, %c0_45] : memref<1x128xf32, #tpu.memory_space<vmem>>, vector<1x128xf32>
    %85 = arith.addf %83, %84 : vector<1x128xf32>
    %86 = tpu.iota {dimensions = array<i32: 1>} : vector<1x128xi32>
    %c64_i32 = arith.constant 64 : i32
    %87 = vector.broadcast %c64_i32 : i32 to vector<1x128xi32>
    %88 = arith.cmpi slt, %86, %87 : vector<1x128xi32>
    %cst_46 = arith.constant -1.000000e+30 : f32
    %89 = vector.broadcast %cst_46 : f32 to vector<1x128xf32>
    %90 = arith.select %88, %85, %89 : vector<1x128xi1>, vector<1x128xf32>
    %cst_47 = arith.constant dense<0xFF800000> : vector<1xf32>
    %91 = vector.multi_reduction <maximumf>, %90, %cst_47 [1] : vector<1x128xf32> to vector<1xf32>
    %92 = vector.shape_cast %91 : vector<1xf32> to vector<1x1xf32>
    %93 = vector.broadcast %92 : vector<1x1xf32> to vector<1x128xf32>
    %94 = arith.subf %90, %93 : vector<1x128xf32>
    %95 = math.exp %94 : vector<1x128xf32>
    %cst_48 = arith.constant dense<0.000000e+00> : vector<1xf32>
    %96 = vector.multi_reduction <add>, %95, %cst_48 [1] : vector<1x128xf32> to vector<1xf32>
    %97 = vector.shape_cast %96 : vector<1xf32> to vector<1x1xf32>
    %98 = vector.broadcast %97 : vector<1x1xf32> to vector<1x128xf32>
    %99 = arith.divf %95, %98 : vector<1x128xf32>
    %100 = vector.shape_cast %99 : vector<1x128xf32> to vector<1x1x128xf32>
    %101 = vector.shape_cast %100 : vector<1x1x128xf32> to vector<1x1x128xf32>
    %102 = vector.broadcast %101 : vector<1x1x128xf32> to vector<1x8x128xf32>
    %c0_49 = arith.constant 0 : index
    %c0_50 = arith.constant 0 : index
    %c0_51 = arith.constant 0 : index
    %103 = vector.load %arg5[%c0_49, %c0_50, %c0_51] : memref<1x8x128xf32, #tpu.memory_space<vmem>>, vector<1x8x128xf32>
    tpu.vector_store %arg5[%c0_49, %c0_50, %c0_51], %102 {strides = array<i32>} : memref<1x8x128xf32, #tpu.memory_space<vmem>>, vector<1x8x128xf32>,
    return
  }
  func.func @transform_0(%arg0: i32) -> (i32, i32, i32) {
    %c0_i32 = arith.constant 0 : i32
    %c0_i32_0 = arith.constant 0 : i32
    %c0_i32_1 = arith.constant 0 : i32
    return %arg0, %c0_i32, %c0_i32_0 : i32, i32, i32
  }
  func.func @transform_1(%arg0: i32) -> (i32, i32) {
    %c0_i32 = arith.constant 0 : i32
    %c0_i32_0 = arith.constant 0 : i32
    %c0_i32_1 = arith.constant 0 : i32
    return %c0_i32, %c0_i32_0 : i32, i32
  }
  func.func @transform_2(%arg0: i32) -> (i32, i32) {
    %c0_i32 = arith.constant 0 : i32
    %c0_i32_0 = arith.constant 0 : i32
    %c0_i32_1 = arith.constant 0 : i32
    return %c0_i32, %c0_i32_0 : i32, i32
  }
  func.func @transform_3(%arg0: i32) -> (i32, i32) {
    %c0_i32 = arith.constant 0 : i32
    %c0_i32_0 = arith.constant 0 : i32
    %c0_i32_1 = arith.constant 0 : i32
    return %c0_i32, %c0_i32_0 : i32, i32
  }
  func.func @transform_4(%arg0: i32) -> (i32, i32, i32) {
    %c0_i32 = arith.constant 0 : i32
    %c0_i32_0 = arith.constant 0 : i32
    %c0_i32_1 = arith.constant 0 : i32
    return %arg0, %c0_i32, %c0_i32_0 : i32, i32, i32
  }
  func.func @transform_5(%arg0: i32) -> (i32, i32) {
    %c0_i32 = arith.constant 0 : i32
    %c0_i32_0 = arith.constant 0 : i32
    %c0_i32_1 = arith.constant 0 : i32
    return %c0_i32, %c0_i32_0 : i32, i32
  }
}

</mosaic_0001>

<bundles_post_ra>
// kernel: attn_decoder_decode.1
= control target key start
LH: loop header
LB: loop body
LE: loop exit
PB: predicated region body
PF: predicated region fallthrough
CT: control target
= control target key end

     0   :  { %11 = vsyncpa [#allocation6], 0  ;;  %s1108_s0 = inlined_call_operand.vmem [shape: f32[4,8,128], index: 0, kind: input, shape index: {}]   ;;  %s1109_s1 = inlined_call_operand.vmem [shape: f32[8,128], index: 1, kind: input, shape index: {}]   ;;  %s1110_s2 = inlined_call_operand.vmem [shape: f32[128,32], index: 2, kind: input, shape index: {}]   ;;  %s1111_s3 = inlined_call_operand.hbm [shape: f32[72,896], index: 3, kind: input, shape index: {}]   ;;  %s1112_s4 = inlined_call_operand.vmem [shape: f32[4,8,128], index: 4, kind: output, shape index: {0}]   ;;  %s1113_s5 = inlined_call_operand.hbm [shape: f32[1,32], index: 5, kind: output, shape index: {1}]  }
   0x1   :  { %12 = vsyncpa [#allocation7], 0  ;;  %s988_s18 = smov 0  }
   0x2 LB: > { %s176_s21 = sshll.u32 %s1111_s3, 4  ;;  %s997_s22 = sadd.s32 4294967295, %s948_s18   ;;  %s948_s18 = sphi %s988_s18, %s18_s18   ;;  %s177_s21 = int_to_ptr.hbm [resolvable:$true] %s176_s21 }
   0x3   : > { %p800_p0 = scmp.ge.s32.totalorder %s948_s18, 1  ;;  %p159_p1 = scmp.lt.s32.totalorder %s948_s18, 5 }
   0x4   : > { %p801_p2 = scmp.ne.s32.totalorder %s997_s22, 0  ;;  %p837_p3 = scmp.eq.s32.totalorder %s997_s22, 0 }
   0x5   : > { %p160_p4 = pnand %p800_p0, %p159_p1  ;;  %s950_s23 = smov [#allocation5]  }
   0x6   : > { %s178_s24 = sshll.u32 %s950_s23, 4  ;;  %s951_s25 = smov 896   ;;  %s179_s24 = int_to_ptr.vmem [resolvable:$true] %s178_s24 }
   0x7   : > { %p833_p5 = pneg %p160_p4  ;;  %s952_s26 = smov 56  }
   0x8   : > { %201 = sbr.rel (%p160_p4) target bundleno = 1922 (0x782), region = 36 }
   0x9   : > { %p834_p6 = pnand %p837_p3, %p833_p5 }
   0xb   : > { %836 = dma.hbm_to_vmem [thread:$0]  (!%p834_p6), %s177_s21, 8064, %s179_s24, [#allocation6], %s951_s25, %s951_s25, %s952_s26  }
   0xd   : > { %939 = dma.done.wait (%p837_p3), [#allocation6], 8064  }
   0xe   : > { %941 = vsyncadd (%p837_p3), [#allocation6], 4294959232  ;;  %p228_p7 = scmp.lt.s32.totalorder %s997_s22, 3 }
   0xf   : > { %239 = sbr.rel (%p801_p2) target bundleno = 197 (0xc5), region = 44 }
  0x10   : > { %s229_s27 = scalar_select %p228_p7, %s997_s22, 3 }
  0x12   : > { %s805_s28 = sshll.u32 %s229_s27, 3 }
  0x13   : > { %s1008_s6 = scalar_lea.vmem %s1108_s0, %s805_s28  ;;  %s1013_s9 = scalar_lea.vmem %s1112_s4, %s805_s28 }
  0x14   : > { %v240_v0 = vld [vmem:[%s1109_s1] sm:$0x1]  ;;  %vm241_vm0 = vcmask 253952   ;;  %v251_v1 = vld [vmem:[#allocation5 + $0x1b0] sm:$0xff]  ;;  %v249_v3 = vld [vmem:[#allocation5 + $0x140] sm:$0xff]  ;;  %vm253_vm1 = vcmask 523264  }
  0x15   : > { %v250_v2 = vld [vmem:[#allocation5 + $0x178] sm:$0xff]  ;;  %242 = vst.msk [vmem:[#allocation2] sm:$0x1] %vm241_vm0, %v240_v0  ;;  %265 = vmatpush.msra.mxu0 %v251_v1  ;;  %v248_v4 = vld [vmem:[#allocation5 + $0x108] sm:$0xff]  ;;  %v247_v5 = vld [vmem:[#allocation5 + $0xd0] sm:$0xff]  ;;  %v953_v23 = vmov 0.0  }
  0x16   : > { %v246_v6 = vld [vmem:[#allocation5 + $0x98] sm:$0xff]  ;;  %v245_v7 = vld [vmem:[#allocation5 + $0x60] sm:$0xff]  ;;  %v244_v8 = vld [vmem:[#allocation5 + $0x28] sm:$0xff] }
  0x17   : > { %266 = vmatpush.msra.mxu0 %v250_v2  ;;  %v243_v9 = vld [vmem:[%s1109_s1 + $0x1] sm:$0x1]  ;;  %v252_v10 = vld [vmem:[#allocation5 + $0x1e8] ss:$0 sm:$0xff] }
  0x18   : > { %vm296_vm2 = vcmp.ne.f32.partialorder %v243_v9, 0.0 }
  0x19   : > { %267 = vmatpush.msra.mxu0 %v249_v3  ;;  %v810_v24 = vsel %vm296_vm2, 1.0, %v953_v23 }
  0x1b   : > { %268 = vmatpush.msra.mxu0 %v248_v4 }
  0x1d   : > { %269 = vmatpush.msra.mxu0 %v247_v5 }
  0x1f   : > { %270 = vmatpush.msra.mxu0 %v246_v6 }
  0x21   : > { %271 = vmatpush.msra.mxu0 %v245_v7 }
  0x23   : > { %272 = vmatpush.msra.mxu0 %v244_v8 }
  0x24   : > { %808 = vmatmul.msk.f32.vlgmr.msra.gmra.mxu0 %vm253_vm1, %v243_v9 }
  0xa1   : > { %v274_v11 = vpop.f32.mrf.mxu0 }
  0xa2   : > { %v275_v12 = vadd.f32 %v274_v11, %v252_v10 }
  0xa4   : > { %v809_v13 = vmul.f32 -1.442695, %v275_v12 }
  0xa6   : > { %857 = vpow2.f32 %v809_v13 }
  0xac   : > { %v858_v14 = vpop.eup %857 }
  0xad   : > { %v280_v15 = vadd.f32 1.0, %v858_v14 }
  0xaf   : > { %859 = vrcp.f32 %v280_v15  ;;  %v292_v19 = vand.u32 2147483648, %v280_v15  ;;  %v290_v21 = vand.u32 2147483647, %v280_v15  ;;  %vm286_vm4 = vweird.f32 %v280_v15 }
  0xb1   : > { %v293_v25 = vor.u32 1.1754944e-38, %v292_v19  ;;  %vm291_vm6 = vcmp.eq.f32.partialorder %v290_v21, 8.507059e+37 }
  0xb5   : > { %v860_v16 = vpop.eup %859 }
  0xb6   : > { %v282_v17 = vmul.f32 %v860_v16, %v280_v15  ;;  %vm287_vm3 = vweird.f32 %v860_v16 }
  0xb7   : > { %vm288_vm5 = vmor %vm286_vm4, %vm287_vm3 }
  0xb8   : > { %v283_v18 = vsub.f32 1.0, %v282_v17 }
  0xba   : > { %v284_v20 = vmul.f32 %v860_v16, %v283_v18 }
  0xbc   : > { %v285_v22 = vadd.f32 %v860_v16, %v284_v20 }
  0xbe   : > { %v289_v26 = vsel %vm288_vm5, %v860_v16, %v285_v22 }
  0xbf   : > { %v294_v27 = vsel %vm291_vm6, %v293_v25, %v289_v26 }
  0xc0   : > { %v299_v28 = vmul.f32 %v810_v24, %v294_v27  ;;  %v302_v29 = vmul.f32 %v294_v27, %v243_v9 }
  0xc2   : > { %v300_v30 = vsub.f32 1.0, %v299_v28  ;;  %303 = vst [vmem:[#allocation4] sm:$0x1] %v302_v29 }
  0xc4   : > { %301 = vst [vmem:[#allocation3] sm:$0x1] %v300_v30 }
  0xc5 PF: > { %v313_v31 = vld [vmem:[#allocation5 + $0x1a0] sm:$0xff]  ;;  %v312_v32 = vld [vmem:[#allocation5 + $0x168] sm:$0xff]  ;;  %v311_v33 = vld [vmem:[#allocation5 + $0x130] sm:$0xff]  ;;  %vm355_vm7 = vcmask 261120   ;;  %vm314_vm8 = vcmask 523264   ;;  %v451_v4 = vlaneseq  ;;  %s954_s14 = smov 64  }
  0xc6   : > { %326 = vmatpush.msra.mxu0 %v313_v31  ;;  %v353_v34 = vld [vmem:[#allocation5 + $0x188] sm:$0xff]  ;;  %v351_v35 = vld [vmem:[#allocation5 + $0x150] sm:$0xff]  ;;  %v310_v36 = vld [vmem:[#allocation5 + $0xf8] sm:$0xff]  ;;  %vm455_vm10 = vcmask 1040384   ;;  %s955_s28 = smov 96   ;;  %s956_s29 = smov 32  }
  0xc7   : > { %371 = vmatpush.msra.mxu1 %v353_v34  ;;  %v349_v37 = vld [vmem:[#allocation5 + $0x118] sm:$0xff]  ;;  %v309_v38 = vld [vmem:[#allocation5 + $0xc0] sm:$0xff]  ;;  %v345_v39 = vld [vmem:[#allocation5 + $0xa8] sm:$0xff]  ;;  %v1031_v7 = vand.u32 127, %v451_v4  ;;  %vm645_vm3 = vcmask 253952   ;;  %p839_p8 = scmp.eq.s32.totalorder %s997_s22, 3 }
  0xc8   : > { %327 = vmatpush.msra.mxu0 %v312_v32  ;;  %v347_v40 = vld [vmem:[#allocation5 + $0xe0] sm:$0xff]  ;;  %414 = vmatpush.msra.mxu3 %v345_v39  ;;  %v343_v41 = vld [vmem:[#allocation5 + $0x70] sm:$0xff]  ;;  %v308_v42 = vld [vmem:[#allocation5 + $0x88] sm:$0xff]  ;;  %s722_s8 = sshll.u32 %s1113_s5, 4  ;;  %s723_s8 = int_to_ptr.hbm [resolvable:$true] %s722_s8 }
  0xc9   : > { %372 = vmatpush.msra.mxu1 %v351_v35  ;;  %v304_v43 = vld [vmem:[#allocation2] sm:$0x1]  ;;  %v346_v44 = vld [vmem:[#allocation5 + $0xb0] sm:$0xff]  ;;  %v350_v51 = vld [vmem:[#allocation5 + $0x120] sm:$0xff]  ;;  %vm453_vm9 = vcmp.lt.s32.totalorder %v1031_v7, 100  ;;  %vm679_vm4 = vcmp.lt.s32.totalorder %v1031_v7, 64 }
  0xca   : > { %328 = vmatpush.msra.mxu0 %v311_v33  ;;  %415 = vmatpush.msra.mxu3 %v343_v41  ;;  %v307_v45 = vld [vmem:[#allocation5 + $0x50] sm:$0xff]  ;;  %v344_v46 = vld [vmem:[#allocation5 + $0x78] sm:$0xff]  ;;  %v348_v52 = vld [vmem:[#allocation5 + $0xe8] sm:$0xff] }
  0xcb   : > { %373 = vmatpush.msra.mxu1 %v349_v37  ;;  %v306_v47 = vld [vmem:[#allocation5 + $0x18] sm:$0xff]  ;;  %v354_v49 = vld [vmem:[#allocation5 + $0x190] sm:$0xff]  ;;  %v518_v54 = vld [vmem:[#allocation5 + $0x80] sm:$0xff] }
  0xcc   : > { %329 = vmatpush.msra.mxu0 %v310_v36  ;;  %v305_v48 = vld [vmem:[%s1008_s6] sm:$0xff]  ;;  %v517_v57 = vld [vmem:[#allocation5 + $0x48] sm:$0xff]  ;;  %v516_v60 = vld [vmem:[#allocation5 + $0x10] sm:$0xff] }
  0xcd   : > { %374 = vmatpush.msra.mxu1 %v347_v40  ;;  %v352_v50 = vld [vmem:[#allocation5 + $0x158] sm:$0xff]  ;;  %v342_v56 = vld [vmem:[#allocation5 + $0x40] sm:$0xff]  ;;  %v340_v59 = vld [vmem:[#allocation5 + $0x8] sm:$0xff] }
  0xce   : > { %330 = vmatpush.msra.mxu0 %v309_v38  ;;  %812 = vmatmul.msk.f32.vlgmr.msra.gmra.mxu1 %vm355_vm7, %v304_v43  ;;  %v519_v53 = vld [vmem:[#allocation5 + $0xb8] sm:$0xff]  ;;  %v339_v58 = vld [vmem:[#allocation5] sm:$0xff]  ;;  %v494_v15 = vld [vmem:[%s1110_s2 + $0x70] sm:$0xff] }
  0xcf   : > { %434 = vmatpush.msrb.mxu1 %v346_v44  ;;  %v341_v55 = vld [vmem:[#allocation5 + $0x38] sm:$0xff]  ;;  %v443_v0 = vld [vmem:[#allocation5 + $0x1c0] ss:$8 sm:$0x3]  ;;  %v490_v19 = vld [vmem:[%s1110_s2 + $0x50] sm:$0xff] }
  0xd0   : > { %331 = vmatpush.msra.mxu0 %v308_v42  ;;  %416 = vmatpush.msra.mxu3 %v341_v55  ;;  %v446_v1 = vperm.slane %v443_v0, 1  ;;  %v445_v8 = vperm.slane %v443_v0, 0  ;;  %v495_v14 = vld [vmem:[%s1110_s2 + $0x78] sm:$0xff]  ;;  %v493_v16 = vld [vmem:[%s1110_s2 + $0x68] sm:$0xff]  ;;  %v492_v17 = vld [vmem:[%s1110_s2 + $0x60] sm:$0xff] }
  0xd1   : > { %435 = vmatpush.msrb.mxu1 %v344_v46  ;;  %496 = vmatpush.msra.mxu2 %v495_v14  ;;  %v491_v18 = vld [vmem:[%s1110_s2 + $0x58] sm:$0xff]  ;;  %v489_v25 = vld [vmem:[%s1110_s2 + $0x48] sm:$0xff]  ;;  %v488_v26 = vld [vmem:[%s1110_s2 + $0x40] sm:$0xff] }
  0xd2   : > { %332 = vmatpush.msra.mxu0 %v307_v45  ;;  %417 = vmatpush.msra.mxu3 %v339_v58  ;;  %v487_v27 = vld [vmem:[%s1110_s2 + $0x38] sm:$0xff]  ;;  %v486_v28 = vld [vmem:[%s1110_s2 + $0x30] sm:$0xff]  ;;  %v485_v29 = vld [vmem:[%s1110_s2 + $0x28] sm:$0xff] }
  0xd3   : > { %436 = vmatpush.msrb.mxu1 %v342_v56  ;;  %497 = vmatpush.msra.mxu2 %v494_v15  ;;  %v484_v30 = vld [vmem:[%s1110_s2 + $0x20] sm:$0xff]  ;;  %v483_v31 = vld [vmem:[%s1110_s2 + $0x18] sm:$0xff]  ;;  %v482_v32 = vld [vmem:[%s1110_s2 + $0x10] sm:$0xff] }
  0xd4   : > { %333 = vmatpush.msra.mxu0 %v306_v47  ;;  %v481_v33 = vld [vmem:[%s1110_s2 + $0x8] sm:$0xff]  ;;  %v480_v34 = vld [vmem:[%s1110_s2] sm:$0xff]  ;;  %v520_v38 = vld [vmem:[#allocation5 + $0xf0] sm:$0xff] }
  0xd5   : > { %811 = vmatmul.msk.f32.vlgmr.msra.gmra.mxu0 %vm314_vm8, %v305_v48  ;;  %437 = vmatpush.msrb.mxu1 %v340_v59  ;;  %v523_v35 = vld [vmem:[#allocation5 + $0x198] sm:$0xff]  ;;  %v522_v36 = vld [vmem:[#allocation5 + $0x160] sm:$0xff]  ;;  %v521_v37 = vld [vmem:[#allocation5 + $0x128] sm:$0xff] }
  0xd6   : > { %391 = vmatpush.msrb.mxu0 %v354_v49  ;;  %498 = vmatpush.msra.mxu2 %v493_v16  ;;  %v570_v55 = vld [vmem:[#allocation5 + $0x20] sm:$0xff]  ;;  %v567_v58 = vld [vmem:[#allocation5 + $0x1d0] ss:$0 sm:$0xff] }
  0xd7   : > { %539 = vmatpush.msrb.mxu3 %v523_v35  ;;  %v675_v35 = vld [vmem:[#allocation3] sm:$0x1] }
  0xd8   : > { %392 = vmatpush.msrb.mxu0 %v352_v50  ;;  %499 = vmatpush.msra.mxu2 %v492_v17 }
  0xd9   : > { %540 = vmatpush.msrb.mxu3 %v522_v36 }
  0xda   : > { %393 = vmatpush.msrb.mxu0 %v350_v51  ;;  %500 = vmatpush.msra.mxu2 %v491_v18  ;;  %v573_v51 = vld [vmem:[#allocation5 + $0xc8] sm:$0xff] }
  0xdb   : > { %541 = vmatpush.msrb.mxu3 %v521_v37  ;;  %590 = vmatpush.msra.mxu1 %v573_v51  ;;  %v677_v37 = vld [vmem:[#allocation4] sm:$0x1] }
  0xdc   : > { %394 = vmatpush.msrb.mxu0 %v348_v52  ;;  %501 = vmatpush.msra.mxu2 %v490_v19 }
  0xdd   : > { %813 = vmatmul.msk.f32.vlgmr.msrb.gmra.mxu0 %vm355_vm7, %v304_v43  ;;  %542 = vmatpush.msrb.mxu3 %v520_v38 }
  0xde   : > { %559 = vmatpush.msra.mxu0 %v519_v53  ;;  %502 = vmatpush.msra.mxu2 %v489_v25  ;;  %v572_v53 = vld [vmem:[#allocation5 + $0x90] sm:$0xff] }
  0xdf   : > { %591 = vmatpush.msra.mxu1 %v572_v53  ;;  %v648_v25 = vld [vmem:[#allocation5 + $0x30] sm:$0xff] }
  0xe0   : > { %560 = vmatpush.msra.mxu0 %v518_v54  ;;  %503 = vmatpush.msra.mxu2 %v488_v26  ;;  %v571_v54 = vld [vmem:[#allocation5 + $0x58] sm:$0xff] }
  0xe1   : > { %592 = vmatpush.msra.mxu1 %v571_v54 }
  0xe2   : > { %561 = vmatpush.msra.mxu0 %v517_v57  ;;  %504 = vmatpush.msra.mxu2 %v487_v27 }
  0xe3   : > { %593 = vmatpush.msra.mxu1 %v570_v55 }
  0xe4   : > { %562 = vmatpush.msra.mxu0 %v516_v60  ;;  %505 = vmatpush.msra.mxu2 %v486_v28 }
  0xe6   : > { %506 = vmatpush.msra.mxu2 %v485_v29 }
  0xe8   : > { %507 = vmatpush.msra.mxu2 %v484_v30 }
  0xea   : > { %508 = vmatpush.msra.mxu2 %v483_v31 }
  0xec   : > { %509 = vmatpush.msra.mxu2 %v482_v32 }
  0xee   : > { %510 = vmatpush.msra.mxu2 %v481_v33  ;;  %v652_v33 = vld [vmem:[#allocation5 + $0x1f0] ss:$0 sm:$0xff] }
  0xf0   : > { %511 = vmatpush.msra.mxu2 %v480_v34 }
 0x14b   : > { %v376_v63 = vpop.f32.mrf.mxu1 }
 0x152   : > { %v335_v61 = vpop.f32.mrf.mxu0 }
 0x153   : > { %v338_v62 = vmul.f32 0.03125, %v335_v61 }
 0x155   : > { %814 = vmatmul.msk.f32.vlgmr.msra.gmra.mxu3 %vm355_vm7, %v338_v62  ;;  %815 = vmatmul.msk.f32.vlgmr.msrb.gmra.mxu1 %vm355_vm7, %v338_v62 }
 0x156   : > { %817 = vmatmul.msk.f32.vlgmr.msra.gmra.mxu0 %vm355_vm7, %v338_v62  ;;  %v574_v62 = vld [vmem:[#allocation5 + $0x1e0] ss:$0 sm:$0xff] }
 0x15a   : > { %v396_v2 = vpop.f32.mrf.mxu0 }
 0x1d2   : > { %v439_v3 = vpop.f32.mrf.mxu1 }
 0x1d3   : > { %v440_v5 = vadd.f32 %v439_v3, %v396_v2  ;;  %v564_v56 = vpop.f32.mrf.mxu0 }
 0x1d5   : > { %v1029_v6 = vadd.f32 %v446_v1, %v440_v5 }
 0x1d7   : > { %619 = vrot.lane.b32.xlu1 %v1029_v6, %s954_s14 }
 0x1d8   : > { %v419_v9 = vpop.f32.mrf.mxu3 }
 0x1d9   : > { %v420_v10 = vadd.f32 %v419_v9, %v376_v63 }
 0x1db   : > { %v449_v11 = vadd.f32 %v445_v8, %v420_v10 }
 0x1dd   : > { %v454_v12 = vsel %vm453_vm9, %v449_v11, -1e+30 }
 0x1de   : > { %v456_v13 = vsel %vm455_vm10, %v454_v12, -inf }
 0x1df   : > { %457 = vmax.xlane.f32.xlu0 %v456_v13 }
 0x249   : > { %v620_v16 = vpop.permute.xlu1 %619 }
 0x252   : > { %v458_v20 = vpop.xlane.xlu0 %457 }
 0x253   : > { %v459_v21 = vsub.f32 %v454_v12, %v458_v20 }
 0x255   : > { %v460_v22 = vmul.f32 1.442695, %v459_v21  ;;  %v861_v21 = vld [vmem:[#allocation2] ss:$0 sm:$0xff] }
 0x257   : > { %862 = vpow2.f32 %v460_v22  ;;  %v651_v22 = vld [vmem:[#allocation5 + $0xd8] sm:$0xff] }
 0x258   : > { %667 = vmatpush.msra.mxu3 %v651_v22 }
 0x25d   : > { %v863_v23 = vpop.eup %862 }
 0x25e   : > { %v462_v24 = vsel %vm455_vm10, %v863_v23, 0.0 }
 0x25f   : > { %463 = vadd.xlane.f32.xlu0 %v462_v24  ;;  %v649_v24 = vld [vmem:[#allocation5 + $0x68] sm:$0xff] }
 0x2d2   : > { %v464_v39 = vpop.xlane.xlu0 %463 }
 0x2d3   : > { %864 = vrcp.f32 %v464_v39  ;;  %v476_v43 = vand.u32 2147483648, %v464_v39  ;;  %v474_v45 = vand.u32 2147483647, %v464_v39  ;;  %vm470_vm12 = vweird.f32 %v464_v39 }
 0x2d5   : > { %v477_v47 = vor.u32 1.1754944e-38, %v476_v43  ;;  %vm475_vm14 = vcmp.eq.f32.partialorder %v474_v45, 8.507059e+37 }
 0x2d9   : > { %v865_v40 = vpop.eup %864 }
 0x2da   : > { %v466_v41 = vmul.f32 %v865_v40, %v464_v39  ;;  %vm471_vm11 = vweird.f32 %v865_v40 }
 0x2db   : > { %vm472_vm13 = vmor %vm470_vm12, %vm471_vm11 }
 0x2dc   : > { %v467_v42 = vsub.f32 1.0, %v466_v41 }
 0x2de   : > { %v468_v44 = vmul.f32 %v865_v40, %v467_v42 }
 0x2e0   : > { %v469_v46 = vadd.f32 %v865_v40, %v468_v44 }
 0x2e2   : > { %v473_v48 = vsel %vm472_vm13, %v865_v40, %v469_v46 }
 0x2e3   : > { %v478_v49 = vsel %vm475_vm14, %v477_v47, %v473_v48 }
 0x2e4   : > { %v479_v50 = vmul.f32 %v863_v23, %v478_v49  ;;  %v650_v23 = vld [vmem:[#allocation5 + $0xa0] sm:$0xff] }
 0x2e5   : > { %668 = vmatpush.msra.mxu3 %v650_v23 }
 0x2e6   : > { %512 = vmatmul.f32.vlgmr.msra.gmra.mxu2 %v479_v50 }
 0x2e7   : > { %669 = vmatpush.msra.mxu3 %v649_v24 }
 0x2e9   : > { %670 = vmatpush.msra.mxu3 %v648_v25 }
 0x369   : > { %v513_v52 = vpop.f32.mrf.mxu2 }
 0x36a   : > { %816 = vmatmul.msk.f32.vlgmr.msrb.gmra.mxu3 %vm355_vm7, %v513_v52 }
 0x3ed   : > { %v544_v57 = vpop.f32.mrf.mxu3 }
 0x3ee   : > { %v565_v59 = vadd.f32 %v564_v56, %v544_v57 }
 0x3f0   : > { %v568_v60 = vadd.f32 %v567_v58, %v565_v59 }
 0x3f2   : > { %v569_v61 = vmax.f32 %v568_v60, 0.0 }
 0x3f4   : > { %818 = vmatmul.msk.f32.vlgmr.msra.gmra.mxu1 %vm355_vm7, %v569_v61 }
 0x471   : > { %v595_v63 = vpop.f32.mrf.mxu1 }
 0x472   : > { %v596_v0 = vadd.f32 %v595_v63, %v574_v62 }
 0x474   : > { %v598_v1 = vadd.f32 %v596_v0, %v1029_v6 }
 0x476   : > { %v819_v2 = vmul.f32 -1.442695, %v598_v1 }
 0x478   : > { %866 = vpow2.f32 %v819_v2 }
 0x47e   : > { %v867_v3 = vpop.eup %866 }
 0x47f   : > { %v602_v4 = vadd.f32 1.0, %v867_v3 }
 0x481   : > { %868 = vrcp.f32 %v602_v4  ;;  %v614_v10 = vand.u32 2147483648, %v602_v4  ;;  %v612_v12 = vand.u32 2147483647, %v602_v4  ;;  %vm608_vm0 = vweird.f32 %v602_v4 }
 0x483   : > { %v615_v14 = vor.u32 1.1754944e-38, %v614_v10  ;;  %vm613_vm2 = vcmp.eq.f32.partialorder %v612_v12, 8.507059e+37 }
 0x487   : > { %v869_v5 = vpop.eup %868 }
 0x488   : > { %v604_v8 = vmul.f32 %v869_v5, %v602_v4  ;;  %vm609_vm15 = vweird.f32 %v869_v5 }
 0x489   : > { %vm610_vm1 = vmor %vm608_vm0, %vm609_vm15 }
 0x48a   : > { %v605_v9 = vsub.f32 1.0, %v604_v8 }
 0x48c   : > { %v606_v11 = vmul.f32 %v869_v5, %v605_v9 }
 0x48e   : > { %v607_v13 = vadd.f32 %v869_v5, %v606_v11 }
 0x490   : > { %v611_v15 = vsel %vm610_vm1, %v869_v5, %v607_v13 }
 0x491   : > { %v616_v6 = vsel %vm613_vm2, %v615_v14, %v611_v15 }
 0x492   : > { %v622_v17 = vmul.f32 %v620_v16, %v616_v6  ;;  %v629_v27 = vsub.f32 1.0, %v616_v6 }
 0x494   : > { %624 = vrot.lane.b32.xlu1 %v622_v17, %s954_s14  ;;  %s957_s14 = smov [#allocation8]  }
 0x495   : > { %s720_s30 = sshll.u32 %s957_s14, 4  ;;  %s721_s30 = int_to_ptr.vmem [resolvable:$true] %s720_s30 }
 0x506   : > { %v625_v18 = vpop.permute.xlu1 %624 }
 0x507   : > { %v627_v19 = vadd.f32 %v625_v18, %v596_v0 }
 0x509   : > { %870 = vtanh.f32 %v627_v19 }
 0x50f   : > { %v871_v20 = vpop.eup %870 }
 0x510   : > { %631 = vrot.lane.b32.xlu2 %v871_v20, %s955_s28 }
 0x518   : > { %636 = vrot.lane.b32.xlu2 %v861_v21, %s956_s29 }
 0x56a   : > { %v632_v26 = vpop.permute.xlu2 %631 }
 0x56b   : > { %v634_v29 = vmul.f32 %v632_v26, %v629_v27 }
 0x572   : > { %v637_v28 = vpop.permute.xlu2 %636 }
 0x573   : > { %v639_v30 = vmul.f32 %v637_v28, %v616_v6 }
 0x575   : > { %v640_v31 = vadd.f32 %v639_v30, %v634_v29 }
 0x577   : > { %642 = vrot.lane.b32.xlu0 %v640_v31, %s955_s28 }
 0x5e9   : > { %v643_v32 = vpop.permute.xlu0 %642 }
 0x5ea   : > { %646 = vst.msk [vmem:[#allocation2] sm:$0x1] %vm645_vm3, %v643_v32  ;;  %820 = vmatmul.msk.f32.vlgmr.msra.gmra.mxu3 %vm355_vm7, %v643_v32 }
 0x5eb   : > { %647 = vst.msk [vmem:[#allocation8] sm:$0x1] %vm645_vm3, %v643_v32 }
 0x5ec   : > { %830 = dma.vmem_to_hbm [thread:$0]  (%p839_p8), %s721_s30, 16, %s723_s8, [#allocation7]  }
 0x66d   : > { %v672_v34 = vpop.f32.mrf.mxu3 }
 0x66e   : > { %v673_v36 = vadd.f32 %v672_v34, %v652_v33 }
 0x670   : > { %v676_v38 = vmul.f32 %v675_v35, %v673_v36 }
 0x672   : > { %v678_v39 = vadd.f32 %v677_v37, %v676_v38 }
 0x674   : > { %v680_v40 = vsel %vm679_vm4, %v678_v39, -1e+30 }
 0x675   : > { %v681_v41 = vsel %vm455_vm10, %v680_v40, -inf }
 0x676   : > { %682 = vmax.xlane.f32.xlu1 %v681_v41 }
 0x6e9   : > { %v683_v42 = vpop.xlane.xlu1 %682 }
 0x6ea   : > { %v684_v43 = vsub.f32 %v680_v40, %v683_v42 }
 0x6ec   : > { %v685_v44 = vmul.f32 1.442695, %v684_v43 }
 0x6ee   : > { %872 = vpow2.f32 %v685_v44 }
 0x6f4   : > { %v873_v45 = vpop.eup %872 }
 0x6f5   : > { %v687_v46 = vsel %vm455_vm10, %v873_v45, 0.0 }
 0x6f6   : > { %688 = vadd.xlane.f32.xlu2 %v687_v46 }
 0x769   : > { %v689_v7 = vpop.xlane.xlu2 %688 }
 0x76a   : > { %874 = vrcp.f32 %v689_v7  ;;  %v701_v50 = vand.u32 2147483648, %v689_v7  ;;  %v699_v52 = vand.u32 2147483647, %v689_v7  ;;  %vm695_vm6 = vweird.f32 %v689_v7 }
 0x76c   : > { %v702_v54 = vor.u32 1.1754944e-38, %v701_v50  ;;  %vm700_vm8 = vcmp.eq.f32.partialorder %v699_v52, 8.507059e+37 }
 0x770   : > { %v875_v47 = vpop.eup %874 }
 0x771   : > { %v691_v48 = vmul.f32 %v875_v47, %v689_v7  ;;  %vm696_vm5 = vweird.f32 %v875_v47 }
 0x772   : > { %vm697_vm7 = vmor %vm695_vm6, %vm696_vm5 }
 0x773   : > { %v692_v49 = vsub.f32 1.0, %v691_v48 }
 0x775   : > { %v693_v51 = vmul.f32 %v875_v47, %v692_v49 }
 0x777   : > { %v694_v53 = vadd.f32 %v875_v47, %v693_v51 }
 0x779   : > { %v698_v55 = vsel %vm697_vm7, %v875_v47, %v694_v53 }
 0x77a   : > { %v703_v56 = vsel %vm700_vm8, %v702_v54, %v698_v55 }
 0x77b   : > { %v704_v57 = vmul.f32 %v873_v45, %v703_v56 }
 0x77d   : > { %v705_v58 = vperm.slane %v704_v57, 0 }
 0x77f   : > { %706 = vst [vmem:[%s1013_s9] sm:$0xff] %v705_v58 }
 0x780   : > { %943 = dma.done.wait (%p839_p8), [#allocation7], 16  }
 0x781   : > { %945 = vsyncadd (%p839_p8), [#allocation7], 4294967280 }
 0x782 PF: > { %s18_s18 = sadd.s32 1, %s948_s18  }
 0x783   : > { %p15_p9 = scmp.ge.s32.totalorder %s18_s18, 6  }
 0x785   :  { %17 = sbr.rel (!%p15_p9) target bundleno = 2 (0x2), region = 85 }
 0x78a   :  { %743 = vsyncpa [#allocation6], 1 }
 0x78b   :  { %745 = vsyncpa [#allocation6 + $0x1], 1 }
 0x78c   :  { %746 = vsyncpa [#allocation7], 1 }
 0x78d   :  { %748 = vsyncpa [#allocation7 + $0x1], 1 }

</bundles_post_ra>
